<compile_context>
chip_gen: v7x
topology: tpu7x:2x2x1
jax: 0.10.0
libtpu: 0.0.40
codegen_flags: <defaults>
</compile_context>

<pallas_src>
import functools
import math

import jax
import jax.numpy as jnp
from jax import lax
from jax.experimental import pallas as pl
from jax.experimental.pallas import tpu as pltpu


# ----------------------------------------------------------------------------
# Helpers
# ----------------------------------------------------------------------------
def _pick_tile(dim, target, min_align):
    """Largest divisor of `dim` that is <= target and a multiple of min_align.

    Falls back to the full `dim` (always legal for a BlockSpec) if none exists.
    """
    if dim <= target:
        return dim
    t = (target // min_align) * min_align
    while t >= min_align:
        if dim % t == 0:
            return t
        t -= min_align
    return dim


# ----------------------------------------------------------------------------
# Tiled linear kernel:  y = x @ W + b
# ----------------------------------------------------------------------------
def _linear_kernel(x_ref, w_ref, b_ref, o_ref, acc_ref):
    kk = pl.program_id(2)

    @pl.when(kk == 0)
    def _():
        acc_ref[...] = jnp.zeros(acc_ref.shape, acc_ref.dtype)

    # bf16 x bf16 -> fp32 accumulate on the MXU.
    acc_ref[...] += jnp.dot(
        x_ref[...], w_ref[...], preferred_element_type=jnp.float32
    )

    @pl.when(kk == pl.num_programs(2) - 1)
    def _():
        # Bias added exactly once (not per k-iteration).
        o_ref[...] = (acc_ref[...] + b_ref[...]).astype(o_ref.dtype)


def pallas_linear(x, w, b, *, out_dtype=jnp.float32):
    """y = x @ w + b.   x: (M, K), w: (K, N), b: (N,)."""
    m, kdim = x.shape
    kdim2, n = w.shape
    assert kdim == kdim2

    tm = _pick_tile(m, 256, 8)       # sublane dim of x / o
    tn = _pick_tile(n, 256, 128)     # lane dim of w / o
    tk = _pick_tile(kdim, 512, 128)  # lane dim of x, sublane dim of w

    b2d = b.reshape(1, n).astype(jnp.float32)
    grid = (m // tm, n // tn, kdim // tk)

    return pl.pallas_call(
        _linear_kernel,
        out_shape=jax.ShapeDtypeStruct((m, n), out_dtype),
        grid=grid,
        in_specs=[
            pl.BlockSpec((tm, tk), lambda i, j, kk: (i, kk)),
            pl.BlockSpec((tk, tn), lambda i, j, kk: (kk, j)),
            pl.BlockSpec((1, tn), lambda i, j, kk: (0, j)),
        ],
        out_specs=pl.BlockSpec((tm, tn), lambda i, j, kk: (i, j)),
        scratch_shapes=[pltpu.VMEM((tm, tn), jnp.float32)],
        compiler_params=pltpu.CompilerParams(
            dimension_semantics=("parallel", "parallel", "arbitrary")
        ),
    )(x, w, b2d)


# ----------------------------------------------------------------------------
# Flash-style multi-head attention kernel (lane-dense (S, d_model) layout)
# ----------------------------------------------------------------------------
def _flash_attn_kernel(q_ref, k_ref, v_ref, o_ref, m_ref, l_ref, acc_ref,
                       *, num_heads, d_k, scale):
    # q_ref: (tq, D), k_ref/v_ref: (tkv, D), o_ref: (tq, D);  D = num_heads*d_k
    # Scratch (persist across the kv grid axis):
    #   m_ref, l_ref : (H, tq, 1)   running max / denominator per head
    #   acc_ref      : (H, tq, d_k) running weighted-value accumulator per head
    kv = pl.program_id(2)

    @pl.when(kv == 0)
    def _():
        m_ref[...] = jnp.full(m_ref.shape, -jnp.inf, dtype=m_ref.dtype)
        l_ref[...] = jnp.zeros(l_ref.shape, l_ref.dtype)
        acc_ref[...] = jnp.zeros(acc_ref.shape, acc_ref.dtype)

    q = q_ref[...]
    k = k_ref[...]
    v = v_ref[...]

    for h in range(num_heads):           # static unroll; H is small
        lo = h * d_k
        q_h = q[:, lo:lo + d_k]           # (tq, d_k)
        k_h = k[:, lo:lo + d_k]           # (tkv, d_k)
        v_h = v[:, lo:lo + d_k]           # (tkv, d_k)

        # scores: contract the d_k axes directly (no k.T relayout on the XLU).
        s = lax.dot_general(
            q_h, k_h,
            dimension_numbers=(((1,), (1,)), ((), ())),
            preferred_element_type=jnp.float32,
        ) * scale                         # (tq, tkv) fp32

        m_prev = m_ref[h]                                          # (tq, 1)
        m_new = jnp.maximum(m_prev, jnp.max(s, axis=-1, keepdims=True))
        alpha = jnp.exp(m_prev - m_new)
        p = jnp.exp(s - m_new)                                     # (tq, tkv)
        l_ref[h] = alpha * l_ref[h] + jnp.sum(p, axis=-1, keepdims=True)
        acc_ref[h] = alpha * acc_ref[h] + jnp.dot(
            p.astype(v_h.dtype), v_h, preferred_element_type=jnp.float32
        )
        m_ref[h] = m_new

    @pl.when(kv == pl.num_programs(2) - 1)
    def _():
        inv_l = pl.reciprocal(l_ref[...], approx=True)             # (H, tq, 1)
        ctx = acc_ref[...] * inv_l                                 # (H, tq, dk)
        # Assemble one lane-dense (tq, H*d_k) slab -> a single unmasked store.
        o_ref[...] = jnp.concatenate(
            [ctx[h] for h in range(num_heads)], axis=-1
        ).astype(o_ref.dtype)


def pallas_flash_attention(q, k, v, *, num_heads):
    """Multi-head scaled-dot-product attention; q/k/v: (B, S, d_model)."""
    B, S, D = q.shape
    assert D % num_heads == 0
    d_k = D // num_heads
    scale = 1.0 / math.sqrt(d_k)

    tq = _pick_tile(S, 256, 8)    # query rows per step
    tkv = _pick_tile(S, 512, 8)   # kv rows per step

    q_spec = pl.BlockSpec((pl.Squeezed(), tq, D), lambda b, qi, kv: (b, qi, 0))
    kv_spec = pl.BlockSpec((pl.Squeezed(), tkv, D), lambda b, qi, kv: (b, kv, 0))
    out_spec = pl.BlockSpec((pl.Squeezed(), tq, D), lambda b, qi, kv: (b, qi, 0))

    return pl.pallas_call(
        functools.partial(
            _flash_attn_kernel, num_heads=num_heads, d_k=d_k, scale=scale
        ),
        out_shape=jax.ShapeDtypeStruct((B, S, D), q.dtype),
        grid=(B, S // tq, S // tkv),
        in_specs=[q_spec, kv_spec, kv_spec],
        out_specs=out_spec,
        scratch_shapes=[
            pltpu.VMEM((num_heads, tq, 1), jnp.float32),     # running max
            pltpu.VMEM((num_heads, tq, 1), jnp.float32),     # running denom
            pltpu.VMEM((num_heads, tq, d_k), jnp.float32),   # accumulator
        ],
        compiler_params=pltpu.CompilerParams(
            dimension_semantics=("parallel", "parallel", "arbitrary")
        ),
    )(q, k, v)


# ----------------------------------------------------------------------------
# Module
# ----------------------------------------------------------------------------
class MultiHeadAttentionPallas:
    """JAX/Pallas port of the PyTorch MultiHeadAttention module."""

    def __init__(self, d_model, num_heads, key, compute_dtype=jnp.bfloat16):
        assert d_model % num_heads == 0
        self.d_model = d_model
        self.num_heads = num_heads
        self.d_k = d_model // num_heads
        self.compute_dtype = compute_dtype

        # nn.Linear-like init: U(-1/sqrt(fan_in), +1/sqrt(fan_in)).
        # Weights stored directly in (Din, Dout) layout -> no .T at call time.
        bound = 1.0 / math.sqrt(d_model)
        keys = jax.random.split(key, 8)

        def make(kw, kb):
            w = jax.random.uniform(
                kw, (d_model, d_model), jnp.float32, minval=-bound, maxval=bound
            )
            b = jax.random.uniform(
                kb, (d_model,), jnp.float32, minval=-bound, maxval=bound
            )
            return w, b

        self.wq, self.bq = make(keys[0], keys[1])
        self.wk, self.bk = make(keys[2], keys[3])
        self.wv, self.bv = make(keys[4], keys[5])
        self.wo, self.bo = make(keys[6], keys[7])

        # Pre-cast compute copies (bf16 MXU inputs) and fused QKV weight for
        # the self-attention (q is k is v) fast path.
        cd = compute_dtype
        self.wq_c, self.wk_c, self.wv_c, self.wo_c = (
            self.wq.astype(cd), self.wk.astype(cd),
            self.wv.astype(cd), self.wo.astype(cd),
        )
        self.wqkv_c = jnp.concatenate([self.wq, self.wk, self.wv], axis=1).astype(cd)
        self.bqkv = jnp.concatenate([self.bq, self.bk, self.bv], axis=0)

    def __call__(self, q, k, v):
        # TODO(synk): `mask` / `return_attention` paths are not implemented.
        B, S, D = q.shape
        cd = self.compute_dtype

        if (q is k) and (k is v):
            # Fused QKV projection: read x once, one kernel launch, 3x-wide N.
            x2d = q.reshape(B * S, D).astype(cd)
            qkv = pallas_linear(x2d, self.wqkv_c, self.bqkv, out_dtype=cd)
            qp, kp, vp = qkv[:, :D], qkv[:, D:2 * D], qkv[:, 2 * D:]
        else:
            qp = pallas_linear(q.reshape(B * S, D).astype(cd), self.wq_c,
                               self.bq, out_dtype=cd)
            kp = pallas_linear(k.reshape(B * S, D).astype(cd), self.wk_c,
                               self.bk, out_dtype=cd)
            vp = pallas_linear(v.reshape(B * S, D).astype(cd), self.wv_c,
                               self.bv, out_dtype=cd)

        qp = qp.reshape(B, S, D)
        kp = kp.reshape(B, S, D)
        vp = vp.reshape(B, S, D)

        # Flash attention in the lane-dense (B, S, d_model) layout — no
        # (B, H, S, d_k) transposes through HBM.
        ctx = pallas_flash_attention(qp, kp, vp, num_heads=self.num_heads)

        out = pallas_linear(ctx.reshape(B * S, D), self.wo_c, self.bo,
                            out_dtype=jnp.float32)
        return out.reshape(B, S, D)

    # Pure-JAX fp32 reference for verification (matches the PyTorch forward).
    def reference(self, q, k, v):
        B, S, D = q.shape
        H, dk = self.num_heads, self.d_k

        def proj(x, w, b):
            y = x @ w + b
            return y.reshape(B, S, H, dk).transpose(0, 2, 1, 3)

        qh = proj(q, self.wq, self.bq)
        kh = proj(k, self.wk, self.bk)
        vh = proj(v, self.wv, self.bv)
        scores = jnp.einsum("bhqd,bhkd->bhqk", qh, kh) / math.sqrt(dk)
        attn = jax.nn.softmax(scores, axis=-1)
        ctx = jnp.einsum("bhqk,bhkd->bhqd", attn, vh)
        ctx = ctx.transpose(0, 2, 1, 3).reshape(B, S, D)
        return ctx @ self.wo + self.bo


if __name__ == "__main__":
    B, S, D, H = 2, 8, 32, 4

    key = jax.random.PRNGKey(0)
    kq, kk, kv, kparams = jax.random.split(key, 4)
    q = jax.random.normal(kq, (B, S, D), jnp.float32)
    k = jax.random.normal(kk, (B, S, D), jnp.float32)
    v = jax.random.normal(kv, (B, S, D), jnp.float32)

    mha = MultiHeadAttentionPallas(d_model=D, num_heads=H, key=kparams)

    # Cross-attention path (three separate projections).
    out = jax.block_until_ready(mha(q, k, v))
    ref = mha.reference(q, k, v)
    # Tolerance accounts for bf16 MXU inputs vs. the fp32 reference.
    if not bool(jnp.allclose(out, ref, atol=3e-2, rtol=3e-2)):
        raise AssertionError("Pallas output does not match JAX reference (qkv)")

    # Self-attention path (fused QKV projection).
    out_self = jax.block_until_ready(mha(q, q, q))
    ref_self = mha.reference(q, q, q)
    if not bool(jnp.allclose(out_self, ref_self, atol=3e-2, rtol=3e-2)):
        raise AssertionError("Pallas output does not match JAX reference (self)")

    print("KERNEL_OK")
</pallas_src>

<mosaic_0001>
module attributes {stable_mosaic.version = 11 : i64} {
  func.func @_linear_kernel(%arg0: i32, %arg1: i32, %arg2: i32, %arg3: memref<16x32xbf16, #tpu.memory_space<vmem>>, %arg4: memref<32x32xbf16, #tpu.memory_space<vmem>>, %arg5: memref<1x32xf32, #tpu.memory_space<vmem>>, %arg6: memref<16x32xbf16, #tpu.memory_space<vmem>>, %arg7: memref<16x32xf32, #tpu.memory_space<vmem>>) attributes {dimension_semantics = [#tpu.dimension_semantics<parallel>, #tpu.dimension_semantics<parallel>, #tpu.dimension_semantics<arbitrary>], iteration_bounds = array<i64: 1, 1, 1>, scalar_prefetch = 0 : i64, scratch_operands = 1 : i64, tpu.core_type = #tpu.core_type<tc>, window_params = [{transform_indices = @transform_0, window_bounds = array<i64: 16, 32>}, {transform_indices = @transform_1, window_bounds = array<i64: 32, 32>}, {transform_indices = @transform_2, window_bounds = array<i64: 1, 32>}, {transform_indices = @transform_3, window_bounds = array<i64: 16, 32>}]} {
    %c0_i32 = arith.constant 0 : i32
    %0 = arith.cmpi eq, %arg2, %c0_i32 : i32
    %1 = arith.extui %0 : i1 to i32
    %c0_i32_0 = arith.constant 0 : i32
    %2 = arith.cmpi ne, %1, %c0_i32_0 : i32
    scf.if %2 {
      %cst_10 = arith.constant 0.000000e+00 : f32
      %12 = vector.broadcast %cst_10 : f32 to vector<16x32xf32>
      %c0_11 = arith.constant 0 : index
      %c0_12 = arith.constant 0 : index
      %13 = vector.load %arg7[%c0_11, %c0_12] : memref<16x32xf32, #tpu.memory_space<vmem>>, vector<16x32xf32>
      tpu.vector_store %arg7[%c0_11, %c0_12], %12 {strides = array<i32>} : memref<16x32xf32, #tpu.memory_space<vmem>>, vector<16x32xf32>,
    } else {
    }
    %c0 = arith.constant 0 : index
    %c0_1 = arith.constant 0 : index
    %3 = vector.load %arg7[%c0, %c0_1] : memref<16x32xf32, #tpu.memory_space<vmem>>, vector<16x32xf32>
    %c0_2 = arith.constant 0 : index
    %c0_3 = arith.constant 0 : index
    %4 = vector.load %arg3[%c0_2, %c0_3] : memref<16x32xbf16, #tpu.memory_space<vmem>>, vector<16x32xbf16>
    %c0_4 = arith.constant 0 : index
    %c0_5 = arith.constant 0 : index
    %5 = vector.load %arg4[%c0_4, %c0_5] : memref<32x32xbf16, #tpu.memory_space<vmem>>, vector<32x32xbf16>
    %cst = arith.constant dense<0.000000e+00> : vector<16x32xf32>
    %6 = tpu.matmul %4, %5, %cst {dimension_numbers = #tpu.dot_dimension_numbers<[1], [0], [0], [1], [0, 0, 1, 1], [], []>} : vector<16x32xbf16>, vector<32x32xbf16>, vector<16x32xf32> -> vector<16x32xf32>
    %7 = arith.addf %3, %6 : vector<16x32xf32>
    %c0_6 = arith.constant 0 : index
    %c0_7 = arith.constant 0 : index
    %8 = vector.load %arg7[%c0_6, %c0_7] : memref<16x32xf32, #tpu.memory_space<vmem>>, vector<16x32xf32>
    tpu.vector_store %arg7[%c0_6, %c0_7], %7 {strides = array<i32>} : memref<16x32xf32, #tpu.memory_space<vmem>>, vector<16x32xf32>,
    %c0_i32_8 = arith.constant 0 : i32
    %9 = arith.cmpi eq, %arg2, %c0_i32_8 : i32
    %10 = arith.extui %9 : i1 to i32
    %c0_i32_9 = arith.constant 0 : i32
    %11 = arith.cmpi ne, %10, %c0_i32_9 : i32
    scf.if %11 {
      %c0_10 = arith.constant 0 : index
      %c0_11 = arith.constant 0 : index
      %12 = vector.load %arg7[%c0_10, %c0_11] : memref<16x32xf32, #tpu.memory_space<vmem>>, vector<16x32xf32>
      %c0_12 = arith.constant 0 : index
      %c0_13 = arith.constant 0 : index
      %13 = vector.load %arg5[%c0_12, %c0_13] : memref<1x32xf32, #tpu.memory_space<vmem>>, vector<1x32xf32>
      %14 = vector.broadcast %13 : vector<1x32xf32> to vector<16x32xf32>
      %15 = arith.addf %12, %14 : vector<16x32xf32>
      %16 = arith.truncf %15 : vector<16x32xf32> to vector<16x32xbf16>
      %c0_14 = arith.constant 0 : index
      %c0_15 = arith.constant 0 : index
      %17 = vector.load %arg6[%c0_14, %c0_15] : memref<16x32xbf16, #tpu.memory_space<vmem>>, vector<16x32xbf16>
      tpu.vector_store %arg6[%c0_14, %c0_15], %16 {strides = array<i32>} : memref<16x32xbf16, #tpu.memory_space<vmem>>, vector<16x32xbf16>,
    } else {
    }
    return
  }
  func.func @transform_0(%arg0: i32, %arg1: i32, %arg2: i32) -> (i32, i32) {
    %c0_i32 = arith.constant 0 : i32
    return %arg0, %arg2 : i32, i32
  }
  func.func @transform_1(%arg0: i32, %arg1: i32, %arg2: i32) -> (i32, i32) {
    %c0_i32 = arith.constant 0 : i32
    return %arg2, %arg1 : i32, i32
  }
  func.func @transform_2(%arg0: i32, %arg1: i32, %arg2: i32) -> (i32, i32) {
    %c0_i32 = arith.constant 0 : i32
    %c0_i32_0 = arith.constant 0 : i32
    return %c0_i32, %arg1 : i32, i32
  }
  func.func @transform_3(%arg0: i32, %arg1: i32, %arg2: i32) -> (i32, i32) {
    %c0_i32 = arith.constant 0 : i32
    return %arg0, %arg1 : i32, i32
  }
}

</mosaic_0001>

<bundles_post_ra>
// kernel: tpu_custom_call.1
= control target key start
LH: loop header
LB: loop body
LE: loop exit
PB: predicated region body
PF: predicated region fallthrough
CT: control target
= control target key end

     0   :  { %8 = vsyncpa [#allocation4], 0  ;;  %s350_s0 = inlined_call_operand.hbm [shape: bf16[16,32], index: 0, kind: input, shape index: {}]   ;;  %s351_s1 = inlined_call_operand.hbm [shape: bf16[32,32], index: 1, kind: input, shape index: {}]   ;;  %s352_s2 = inlined_call_operand.vmem [shape: f32[1,32], index: 2, kind: input, shape index: {}]   ;;  %s353_s3 = inlined_call_operand.hbm [shape: bf16[16,32], index: 3, kind: output, shape index: {}]  }
   0x1   :  { %9 = vsyncpa [#allocation7], 0 }
   0x2   :  { %10 = vsyncpa [#allocation5], 0  ;;  %s270_s12 = smov [#allocation3]   ;;  %s198_s16 = scalar_lea.hbm %s350_s0, 128 }
   0x3   :  { %s16_s13 = sshll.u32 %s270_s12, 4  ;;  %p199_p0 = scmp.ne.s32.totalorder %s350_s0, %s198_s16  ;;  %s17_s13 = int_to_ptr.vmem [resolvable:$true] %s16_s13 }
   0x4   :  { %p202_p1 = scmp.lt.u32.totalorder %s198_s16, %s350_s0 }
   0x6   :  { %p204_p2 = pnand %p202_p1, %p199_p0 }
   0x8   :  { %207 = shalt.err (!%p204_p2)
}
   0x9   :  { %s208_s21 = scalar_lea.vmem %s17_s13, 128  ;;  %p213_p4 = scmp.lt.s32.totalorder %s17_s13, %s17_s13 }
   0xa   :  { %p209_p3 = scmp.ne.s32.totalorder %s17_s13, %s208_s21  ;;  %p214_p5 = scmp.lt.s32.totalorder %s208_s21, %s208_s21 }
   0xc   :  { %p215_p6 = por %p214_p5, %p213_p4 }
   0xe   :  { %p216_p7 = pnand %p215_p6, %p209_p3 }
  0x10   :  { %219 = shalt.err (!%p216_p7)
}
  0x11   :  { %s271_s22 = smov 64   ;;  %s272_s23 = smov 4  }
  0x12   :  { %22 = dma.hbm_to_vmem [thread:$0]  %s350_s0, 128, %s17_s13, [#allocation4], %s271_s22, %s271_s22, %s272_s23  }
  0x13   :  { %s273_s26 = smov [#allocation6]   ;;  %s220_s30 = scalar_lea.hbm %s351_s1, 256 }
  0x14   :  { %s28_s27 = sshll.u32 %s273_s26, 4  ;;  %p221_p8 = scmp.ne.s32.totalorder %s351_s1, %s220_s30  ;;  %s29_s27 = int_to_ptr.vmem [resolvable:$true] %s28_s27 }
  0x15   :  { %p224_p9 = scmp.lt.u32.totalorder %s220_s30, %s351_s1 }
  0x17   :  { %p226_p10 = pnand %p224_p9, %p221_p8 }
  0x19   :  { %229 = shalt.err (!%p226_p10)
}
  0x1a   :  { %s230_s8 = scalar_lea.vmem %s29_s27, 256  ;;  %p235_p12 = scmp.lt.s32.totalorder %s29_s27, %s29_s27 }
  0x1b   :  { %p231_p11 = scmp.ne.s32.totalorder %s29_s27, %s230_s8  ;;  %p236_p13 = scmp.lt.s32.totalorder %s230_s8, %s230_s8 }
  0x1d   :  { %p237_p0 = por %p236_p13, %p235_p12 }
  0x1f   :  { %p238_p1 = pnand %p237_p0, %p231_p11 }
  0x21   :  { %241 = shalt.err (!%p238_p1)
}
  0x22   :  { %34 = dma.hbm_to_vmem [thread:$0]  %s351_s1, 256, %s29_s27, [#allocation7], %s271_s22, %s271_s22, %s272_s23  }
  0x23   :  { %264 = dma.done.wait [#allocation4], 128  }
  0x24   :  { %265 = vsyncadd [#allocation4], 4294967168 }
  0x25   :  { %266 = dma.done.wait [#allocation7], 256  }
  0x26   :  { %267 = vsyncadd [#allocation7], 4294967040  ;;  %vm48_vm0 = vcmask 261120   ;;  %v274_v0 = vmov 0.0   ;;  %vm275_vm1 = vmmov 0   ;;  %v195_v1 = vld [vmem:[#allocation6] sm:$0xff]  }
  0x27   :  { %180 = vmatprep.subr.bf16.mxu0 %v274_v0  ;;  %184 = vmatprep.mubr.msk.bf16.mxu0 %vm275_vm1, %v274_v0  ;;  %49 = vst.msk [vmem:[#allocation2] sm:$0xff] %vm48_vm0, %v274_v0  ;;  %50 = vst.msk [vmem:[#allocation2 + $0x8] sm:$0xff] %vm48_vm0, %v274_v0  ;;  %v196_v2 = vld [vmem:[#allocation6 + $0x8] sm:$0xff]   ;;  %v197_v3 = vld [vmem:[#allocation3] sm:$0xff]   ;;  %vm147_vm2 = vcmask 257024   ;;  %s276_s11 = smov [#allocation8]  }
  0x28   :  { %181 = vmatpush3.bf16.msra.mxu0 %v195_v1  ;;  %v172_v12 = vld [vmem:[%s352_s2] ss:$0 sm:$0xff]  ;;  %s155_s12 = sshll.u32 %s276_s11, 4  ;;  %s156_s12 = int_to_ptr.vmem [resolvable:$true] %s155_s12 }
  0x29   :  { %182 = vmatprep.subr.bf16.mxu0 %v274_v0  ;;  %s242_s13 = scalar_lea.vmem %s156_s12, 128  ;;  %p247_p3 = scmp.lt.s32.totalorder %s156_s12, %s156_s12 }
  0x2a   :  { %p243_p2 = scmp.ne.s32.totalorder %s156_s12, %s242_s13  ;;  %p248_p4 = scmp.lt.s32.totalorder %s242_s13, %s242_s13 }
  0x2c   :  { %183 = vmatpush3.bf16.msra.mxu0 %v196_v2  ;;  %p249_p5 = por %p248_p4, %p247_p3 }
  0x2e   :  { %v51_v4 = vld [vmem:[#allocation2] sm:$0xff]  ;;  %v52_v6 = vld [vmem:[#allocation2 + $0x8] sm:$0xff]  ;;  %p250_p6 = pnand %p249_p5, %p243_p2 }
  0x2f   :  { %185 = vmatmul.mubr.msk.bf16.vlgmr.msra.gmra.mrb[0].mxu0 %vm48_vm0, %v197_v3 }
 0x102   :  { %v114_v5 = vpop.f32.mrb[0].mxu0 }
 0x103   :  { %v121_v7 = vadd.f32 %v114_v5, %v51_v4  ;;  %v186_v8 = vpop.f32.mrb[1].mxu0 }
 0x104   :  { %v117_v9 = vpop.f32.mrb[2].mxu0 }
 0x105   :  { %123 = vst.msk [vmem:[#allocation2] sm:$0xff] %vm48_vm0, %v121_v7  ;;  %v122_v10 = vadd.f32 %v117_v9, %v52_v6  ;;  %v187_v11 = vpop.f32.mrb[3].mxu0 }
 0x107   :  { %124 = vst.msk [vmem:[#allocation2 + $0x8] sm:$0xff] %vm48_vm0, %v122_v10 }
 0x10c   :  { %v128_v13 = vld [vmem:[#allocation2] sm:$0xff] }
 0x10d   :  { %v137_v14 = vadd.f32 %v172_v12, %v128_v13 }
 0x10e   :  { %v129_v15 = vld [vmem:[#allocation2 + $0x8] sm:$0xff] }
 0x10f   :  { %v138_v16 = vadd.f32 %v172_v12, %v129_v15  ;;  %v175_v17 = vpack.c.bf16 %v137_v14, %v137_v14 }
 0x111   :  { %v176_v18 = vpack.c.bf16 %v138_v16, %v138_v16  ;;  %148 = vst.msk [vmem:[#allocation8] sm:$0xf] %vm147_vm2, %v175_v17 }
 0x113   :  { %149 = vst.msk [vmem:[#allocation8 + $0x4] sm:$0xf] %vm147_vm2, %v176_v18 }
 0x114   :  { %253 = shalt.err (!%p250_p6)
}
 0x115   :  { %s254_s15 = scalar_lea.hbm %s353_s3, 128 }
 0x116   :  { %p255_p7 = scmp.ne.s32.totalorder %s353_s3, %s254_s15  ;;  %p258_p8 = scmp.lt.u32.totalorder %s254_s15, %s353_s3 }
 0x118   :  { %p260_p9 = pnand %p258_p8, %p255_p7 }
 0x11a   :  { %263 = shalt.err (!%p260_p9)
}
 0x11b   :  { %161 = dma.vmem_to_hbm [thread:$0]  %s156_s12, 128, %s353_s3, [#allocation5], %s271_s22, %s271_s22, %s272_s23  }
 0x11c   :  { %268 = dma.done.wait [#allocation5], 128  }
 0x11d   :  { %269 = vsyncadd [#allocation5], 4294967168 }
 0x11e   :  { %165 = vsyncpa [#allocation4], 1 }
 0x11f   :  { %166 = vsyncpa [#allocation7], 1 }
 0x120   :  { %167 = vsyncpa [#allocation5], 1 }

</bundles_post_ra>
